<compile_context>
chip_gen: v7x
topology: tpu7x:2x2x1
jax: 0.10.0
libtpu: 0.0.40
codegen_flags: <defaults>
</compile_context>

<pallas_src>
import functools

import jax
import jax.numpy as jnp
from jax.experimental import pallas as pl
from jax.experimental.pallas import tpu as pltpu


def _round_up(x, m):
    return ((x + m - 1) // m) * m


def _triplet_kernel(a_ref, p_ref, n_ref, out_ref, *, inv_beta, one_plus_eps):
    # a_ref/p_ref/n_ref: (TM, D) tiles; out_ref: (4, TM) lane-dense slab.
    a = a_ref[...].astype(jnp.float32)
    p = p_ref[...].astype(jnp.float32)
    n = n_ref[...].astype(jnp.float32)

    diff_pos = a - p                                   # VPU elementwise
    dist_pos = jnp.sum(diff_pos * diff_pos, axis=1)    # lane reduce -> (TM,)

    diff_neg = a - n
    dist_neg = jnp.sum(diff_neg * diff_neg, axis=1)    # (TM,)

    # -log(d * (1/beta) + (1 + eps))   (EUP transcendental; constants folded)
    tdp = -jnp.log(dist_pos * inv_beta + one_plus_eps)
    tdn = -jnp.log(dist_neg * inv_beta + one_plus_eps)

    out_ref[0, :] = dist_pos
    out_ref[1, :] = dist_neg
    out_ref[2, :] = tdp
    out_ref[3, :] = tdn


def _choose_tile_rows(n_rows, emb_dim, elem_bytes, *, input_vmem_budget=24 << 20):
    """Row-tile size: as big as the VMEM budget allows, >=2 grid steps if possible."""
    lane_d = _round_up(max(emb_dim, 1), 128)           # lane padding in VMEM
    # 3 inputs x 2 pipeline buffers of (tm, lane_d) blocks must fit the budget.
    tm_vmem = (input_vmem_budget // (6 * lane_d * elem_bytes)) // 128 * 128
    tm_vmem = max(tm_vmem, 128)
    if n_rows > 128:
        # Ensure the grid has >= 2 steps so v7x's two TensorCores both work.
        tm_cap = _round_up(pl.cdiv(n_rows, 2), 128)
    else:
        tm_cap = 128
    return max(128, min(tm_vmem, tm_cap))


def lossless_triplet_loss(emb_anchor, emb_pos, emb_neg, *, beta, epsilon=1e-8):
    """Pallas TPU implementation of LosslessTripletLoss.forward."""
    N, D = emb_anchor.shape
    assert emb_pos.shape == (N, D) and emb_neg.shape == (N, D)

    elem_bytes = jnp.dtype(emb_anchor.dtype).itemsize
    tm = _choose_tile_rows(N, D, elem_bytes)
    grid = (pl.cdiv(N, tm),)

    # Explicit VMEM limit: actual double-buffered block footprint + headroom,
    # kept under v7x's 64 MiB physical VMEM and above v5e's 16 MiB default.
    lane_d = _round_up(max(D, 1), 128)
    in_block_bytes = 6 * tm * lane_d * elem_bytes      # 3 inputs x 2 buffers
    out_block_bytes = 2 * 8 * tm * 4                   # (4, tm) f32, 2 buffers
    vmem_limit = max(in_block_bytes + out_block_bytes + (2 << 20), 16 << 20)
    vmem_limit = min(vmem_limit, 56 << 20)

    in_spec = pl.BlockSpec((tm, D), lambda i: (i, 0))
    out_spec = pl.BlockSpec((4, tm), lambda i: (0, i))

    kernel = functools.partial(
        _triplet_kernel,
        inv_beta=1.0 / float(beta),
        one_plus_eps=1.0 + float(epsilon),
    )

    cost = pl.CostEstimate(
        flops=6 * N * D + 8 * N,
        transcendentals=2 * N,
        bytes_accessed=3 * N * D * elem_bytes + 4 * N * 4,
    )

    packed = pl.pallas_call(
        kernel,
        out_shape=jax.ShapeDtypeStruct((4, N), jnp.float32),
        grid=grid,
        in_specs=[in_spec, in_spec, in_spec],
        out_specs=out_spec,
        compiler_params=pltpu.CompilerParams(
            dimension_semantics=("parallel",),
            vmem_limit_bytes=int(vmem_limit),
        ),
        cost_estimate=cost,
    )(emb_anchor, emb_pos, emb_neg)

    dist_pos = packed[0]
    dist_neg = packed[1]
    transformed_dist_pos = packed[2]
    transformed_dist_neg = packed[3]
    return dist_pos, dist_neg, transformed_dist_pos, transformed_dist_neg


if __name__ == "__main__":
    # Module config (deterministic, in-script): emb_dim=32, beta=4.0
    emb_dim = 32
    beta = 4.0
    epsilon = 1e-8
    batch = 8

    key = jax.random.PRNGKey(0)
    ka, kp, kn = jax.random.split(key, 3)
    emb_anchor = jax.random.normal(ka, (batch, emb_dim), dtype=jnp.float32)
    emb_pos = jax.random.normal(kp, (batch, emb_dim), dtype=jnp.float32)
    emb_neg = jax.random.normal(kn, (batch, emb_dim), dtype=jnp.float32)

    dist_pos, dist_neg, tdp, tdn = jax.block_until_ready(
        lossless_triplet_loss(emb_anchor, emb_pos, emb_neg,
                              beta=beta, epsilon=epsilon)
    )

    # Pure-JAX reference check (matches the PyTorch forward).
    ref_dp = jnp.sum((emb_anchor - emb_pos) ** 2, axis=1)
    ref_dn = jnp.sum((emb_anchor - emb_neg) ** 2, axis=1)
    ref_tdp = -jnp.log(ref_dp / beta + 1.0 + epsilon)
    ref_tdn = -jnp.log(ref_dn / beta + 1.0 + epsilon)

    assert dist_pos.shape == (batch,) and tdp.shape == (batch,)
    assert jnp.allclose(dist_pos, ref_dp, atol=1e-5, rtol=1e-5)
    assert jnp.allclose(dist_neg, ref_dn, atol=1e-5, rtol=1e-5)
    assert jnp.allclose(tdp, ref_tdp, atol=1e-5, rtol=1e-5)
    assert jnp.allclose(tdn, ref_tdn, atol=1e-5, rtol=1e-5)

    # Also exercise a ragged, multi-block case (N not a multiple of the tile).
    n2 = 300
    ka2, kp2, kn2 = jax.random.split(jax.random.PRNGKey(1), 3)
    a2 = jax.random.normal(ka2, (n2, emb_dim), dtype=jnp.float32)
    p2 = jax.random.normal(kp2, (n2, emb_dim), dtype=jnp.float32)
    n2e = jax.random.normal(kn2, (n2, emb_dim), dtype=jnp.float32)
    dp2, dn2, tdp2, tdn2 = jax.block_until_ready(
        lossless_triplet_loss(a2, p2, n2e, beta=beta, epsilon=epsilon)
    )
    assert jnp.allclose(dp2, jnp.sum((a2 - p2) ** 2, axis=1), atol=1e-5, rtol=1e-5)
    assert jnp.allclose(tdn2, -jnp.log(jnp.sum((a2 - n2e) ** 2, axis=1) / beta
                                       + 1.0 + epsilon), atol=1e-5, rtol=1e-5)

    print("KERNEL_OK")
</pallas_src>

<mosaic_0001>
module attributes {stable_mosaic.version = 11 : i64} {
  func.func @_triplet_kernel(%arg0: i32, %arg1: memref<128x32xf32, #tpu.memory_space<vmem>>, %arg2: memref<128x32xf32, #tpu.memory_space<vmem>>, %arg3: memref<128x32xf32, #tpu.memory_space<vmem>>, %arg4: memref<4x128xf32, #tpu.memory_space<vmem>>) attributes {dimension_semantics = [#tpu.dimension_semantics<parallel>], iteration_bounds = array<i64: 1>, scalar_prefetch = 0 : i64, scratch_operands = 0 : i64, tpu.core_type = #tpu.core_type<tc>, window_params = [{transform_indices = @transform_0, window_bounds = array<i64: 128, 32>}, {transform_indices = @transform_1, window_bounds = array<i64: 128, 32>}, {transform_indices = @transform_2, window_bounds = array<i64: 128, 32>}, {transform_indices = @transform_3, window_bounds = array<i64: 4, 128>}]} {
    %c0 = arith.constant 0 : index
    %c0_0 = arith.constant 0 : index
    %0 = vector.load %arg1[%c0, %c0_0] : memref<128x32xf32, #tpu.memory_space<vmem>>, vector<128x32xf32>
    %c0_1 = arith.constant 0 : index
    %c0_2 = arith.constant 0 : index
    %1 = vector.load %arg2[%c0_1, %c0_2] : memref<128x32xf32, #tpu.memory_space<vmem>>, vector<128x32xf32>
    %c0_3 = arith.constant 0 : index
    %c0_4 = arith.constant 0 : index
    %2 = vector.load %arg3[%c0_3, %c0_4] : memref<128x32xf32, #tpu.memory_space<vmem>>, vector<128x32xf32>
    %3 = arith.subf %0, %1 : vector<128x32xf32>
    %4 = arith.mulf %3, %3 : vector<128x32xf32>
    %cst = arith.constant dense<0.000000e+00> : vector<128xf32>
    %5 = vector.multi_reduction <add>, %4, %cst [1] : vector<128x32xf32> to vector<128xf32>
    %6 = arith.subf %0, %2 : vector<128x32xf32>
    %7 = arith.mulf %6, %6 : vector<128x32xf32>
    %cst_5 = arith.constant dense<0.000000e+00> : vector<128xf32>
    %8 = vector.multi_reduction <add>, %7, %cst_5 [1] : vector<128x32xf32> to vector<128xf32>
    %cst_6 = arith.constant 2.500000e-01 : f32
    %9 = vector.broadcast %cst_6 : f32 to vector<128xf32>
    %10 = arith.mulf %5, %9 : vector<128xf32>
    %cst_7 = arith.constant 1.000000e+00 : f32
    %11 = vector.broadcast %cst_7 : f32 to vector<128xf32>
    %12 = arith.addf %10, %11 : vector<128xf32>
    %13 = math.log %12 : vector<128xf32>
    %cst_8 = arith.constant 0.000000e+00 : f32
    %14 = vector.broadcast %cst_8 : f32 to vector<128xf32>
    %15 = arith.subf %14, %13 : vector<128xf32>
    %cst_9 = arith.constant 2.500000e-01 : f32
    %16 = vector.broadcast %cst_9 : f32 to vector<128xf32>
    %17 = arith.mulf %8, %16 : vector<128xf32>
    %cst_10 = arith.constant 1.000000e+00 : f32
    %18 = vector.broadcast %cst_10 : f32 to vector<128xf32>
    %19 = arith.addf %17, %18 : vector<128xf32>
    %20 = math.log %19 : vector<128xf32>
    %cst_11 = arith.constant 0.000000e+00 : f32
    %21 = vector.broadcast %cst_11 : f32 to vector<128xf32>
    %22 = arith.subf %21, %20 : vector<128xf32>
    %c0_12 = arith.constant 0 : index
    %c0_13 = arith.constant 0 : index
    %23 = vector.load %arg4[%c0_12, %c0_13] : memref<4x128xf32, #tpu.memory_space<vmem>>, vector<1x128xf32>
    %24 = vector.shape_cast %23 : vector<1x128xf32> to vector<128xf32>
    %25 = vector.shape_cast %5 : vector<128xf32> to vector<1x128xf32>
    tpu.vector_store %arg4[%c0_12, %c0_13], %25 {strides = array<i32>} : memref<4x128xf32, #tpu.memory_space<vmem>>, vector<1x128xf32>,
    %c1 = arith.constant 1 : index
    %c0_14 = arith.constant 0 : index
    %26 = vector.load %arg4[%c1, %c0_14] : memref<4x128xf32, #tpu.memory_space<vmem>>, vector<1x128xf32>
    %27 = vector.shape_cast %26 : vector<1x128xf32> to vector<128xf32>
    %28 = vector.shape_cast %8 : vector<128xf32> to vector<1x128xf32>
    tpu.vector_store %arg4[%c1, %c0_14], %28 {strides = array<i32>} : memref<4x128xf32, #tpu.memory_space<vmem>>, vector<1x128xf32>,
    %c2 = arith.constant 2 : index
    %c0_15 = arith.constant 0 : index
    %29 = vector.load %arg4[%c2, %c0_15] : memref<4x128xf32, #tpu.memory_space<vmem>>, vector<1x128xf32>
    %30 = vector.shape_cast %29 : vector<1x128xf32> to vector<128xf32>
    %31 = vector.shape_cast %15 : vector<128xf32> to vector<1x128xf32>
    tpu.vector_store %arg4[%c2, %c0_15], %31 {strides = array<i32>} : memref<4x128xf32, #tpu.memory_space<vmem>>, vector<1x128xf32>,
    %c3 = arith.constant 3 : index
    %c0_16 = arith.constant 0 : index
    %32 = vector.load %arg4[%c3, %c0_16] : memref<4x128xf32, #tpu.memory_space<vmem>>, vector<1x128xf32>
    %33 = vector.shape_cast %32 : vector<1x128xf32> to vector<128xf32>
    %34 = vector.shape_cast %22 : vector<128xf32> to vector<1x128xf32>
    tpu.vector_store %arg4[%c3, %c0_16], %34 {strides = array<i32>} : memref<4x128xf32, #tpu.memory_space<vmem>>, vector<1x128xf32>,
    return
  }
  func.func @transform_0(%arg0: i32) -> (i32, i32) {
    %c0_i32 = arith.constant 0 : i32
    %c0_i32_0 = arith.constant 0 : i32
    return %arg0, %c0_i32 : i32, i32
  }
  func.func @transform_1(%arg0: i32) -> (i32, i32) {
    %c0_i32 = arith.constant 0 : i32
    %c0_i32_0 = arith.constant 0 : i32
    return %arg0, %c0_i32 : i32, i32
  }
  func.func @transform_2(%arg0: i32) -> (i32, i32) {
    %c0_i32 = arith.constant 0 : i32
    %c0_i32_0 = arith.constant 0 : i32
    return %arg0, %c0_i32 : i32, i32
  }
  func.func @transform_3(%arg0: i32) -> (i32, i32) {
    %c0_i32 = arith.constant 0 : i32
    %c0_i32_0 = arith.constant 0 : i32
    return %c0_i32, %arg0 : i32, i32
  }
}

</mosaic_0001>

<bundles_post_ra>
// kernel: tpu_custom_call.1
= control target key start
LH: loop header
LB: loop body
LE: loop exit
PB: predicated region body
PF: predicated region fallthrough
CT: control target
= control target key end

     0   :  { %8 = vsyncpa [#allocation3], 0  ;;  %s1468_s0 = inlined_call_operand.hbm [shape: f32[8,32], index: 0, kind: input, shape index: {}]   ;;  %s1469_s1 = inlined_call_operand.hbm [shape: f32[8,32], index: 1, kind: input, shape index: {}]   ;;  %s1470_s2 = inlined_call_operand.hbm [shape: f32[8,32], index: 2, kind: input, shape index: {}]   ;;  %s1471_s3 = inlined_call_operand.hbm [shape: f32[4,8], index: 3, kind: output, shape index: {}]  }
   0x1   :  { %9 = vsyncpa [#allocation6], 0 }
   0x2   :  { %10 = vsyncpa [#allocation4], 0 }
   0x3   :  { %15 = vsyncadd [#allocation3], 1920  ;;  %s1025_s12 = smov [#allocation2]   ;;  %s931_s16 = scalar_lea.hbm %s1468_s0, 128 }
   0x4   :  { %s16_s13 = sshll.u32 %s1025_s12, 4  ;;  %p932_p0 = scmp.ne.s32.totalorder %s1468_s0, %s931_s16  ;;  %s17_s13 = int_to_ptr.vmem [resolvable:$true] %s16_s13 }
   0x5   :  { %p935_p1 = scmp.lt.u32.totalorder %s931_s16, %s1468_s0 }
   0x7   :  { %p937_p2 = pnand %p935_p1, %p932_p0 }
   0x9   :  { %940 = shalt.err (!%p937_p2)
}
   0xa   :  { %s941_s21 = scalar_lea.vmem %s17_s13, 128  ;;  %s945_s22 = scalar_lea.vmem %s17_s13, 2048 }
   0xb   :  { %p942_p3 = scmp.ne.s32.totalorder %s17_s13, %s941_s21  ;;  %p946_p4 = scmp.lt.s32.totalorder %s17_s13, %s17_s13 }
   0xc   :  { %p947_p5 = scmp.lt.s32.totalorder %s945_s22, %s941_s21 }
   0xe   :  { %p948_p6 = por %p947_p5, %p946_p4 }
  0x10   :  { %p949_p7 = pnand %p948_p6, %p942_p3 }
  0x12   :  { %952 = shalt.err (!%p949_p7)
}
  0x13   :  { %s1026_s23 = smov 128   ;;  %s1027_s24 = smov 8  }
  0x14   :  { %22 = dma.hbm_to_vmem [thread:$0]  %s1468_s0, 128, %s17_s13, [#allocation3], %s1026_s23, %s1026_s23, %s1027_s24  }
  0x15   :  { %27 = vsyncadd [#allocation6], 1920  ;;  %s1028_s27 = smov [#allocation5]   ;;  %s953_s4 = scalar_lea.hbm %s1469_s1, 128 }
  0x16   :  { %s28_s28 = sshll.u32 %s1028_s27, 4  ;;  %p954_p8 = scmp.ne.s32.totalorder %s1469_s1, %s953_s4  ;;  %s29_s28 = int_to_ptr.vmem [resolvable:$true] %s28_s28 }
  0x17   :  { %p957_p9 = scmp.lt.u32.totalorder %s953_s4, %s1469_s1 }
  0x19   :  { %p959_p10 = pnand %p957_p9, %p954_p8 }
  0x1b   :  { %962 = shalt.err (!%p959_p10)
}
  0x1c   :  { %s963_s9 = scalar_lea.vmem %s29_s28, 128  ;;  %s967_s0 = scalar_lea.vmem %s29_s28, 2048 }
  0x1d   :  { %p964_p11 = scmp.ne.s32.totalorder %s29_s28, %s963_s9  ;;  %p968_p12 = scmp.lt.s32.totalorder %s29_s28, %s29_s28 }
  0x1e   :  { %p969_p13 = scmp.lt.s32.totalorder %s967_s0, %s963_s9 }
  0x20   :  { %p970_p0 = por %p969_p13, %p968_p12 }
  0x22   :  { %p971_p1 = pnand %p970_p0, %p964_p11 }
  0x24   :  { %974 = shalt.err (!%p971_p1)
}
  0x25   :  { %34 = dma.hbm_to_vmem [thread:$0]  %s1469_s1, 128, %s29_s28, [#allocation6], %s1026_s23, %s1026_s23, %s1027_s24  }
  0x26   :  { %39 = vsyncadd [#allocation6], 1920  ;;  %s1029_s12 = smov [#allocation7]   ;;  %s975_s16 = scalar_lea.hbm %s1470_s2, 128 }
  0x27   :  { %s40_s13 = sshll.u32 %s1029_s12, 4  ;;  %p976_p2 = scmp.ne.s32.totalorder %s1470_s2, %s975_s16  ;;  %s41_s13 = int_to_ptr.vmem [resolvable:$true] %s40_s13 }
  0x28   :  { %p979_p3 = scmp.lt.u32.totalorder %s975_s16, %s1470_s2 }
  0x2a   :  { %p981_p4 = pnand %p979_p3, %p976_p2 }
  0x2c   :  { %984 = shalt.err (!%p981_p4)
}
  0x2d   :  { %s985_s21 = scalar_lea.vmem %s41_s13, 128  ;;  %s989_s1 = scalar_lea.vmem %s41_s13, 2048 }
  0x2e   :  { %p986_p5 = scmp.ne.s32.totalorder %s41_s13, %s985_s21  ;;  %p990_p6 = scmp.lt.s32.totalorder %s41_s13, %s41_s13 }
  0x2f   :  { %p991_p7 = scmp.lt.s32.totalorder %s989_s1, %s985_s21 }
  0x31   :  { %p992_p8 = por %p991_p7, %p990_p6 }
  0x33   :  { %p993_p9 = pnand %p992_p8, %p986_p5 }
  0x35   :  { %996 = shalt.err (!%p993_p9)
}
  0x36   :  { %46 = dma.hbm_to_vmem [thread:$0]  %s1470_s2, 128, %s41_s13, [#allocation6], %s1026_s23, %s1026_s23, %s1027_s24  }
  0x37   :  { %1019 = dma.done.wait [#allocation3], 2048  }
  0x38   :  { %1020 = vsyncadd [#allocation3], 4294965248 }
  0x39   :  { %1021 = dma.done.wait [#allocation6], 4096  }
  0x3a   :  { %1022 = vsyncadd [#allocation6], 4294963200  ;;  %v56_v0 = vld [vmem:[#allocation2] sm:$0xff]  ;;  %v57_v5 = vld [vmem:[#allocation2 + $0x8] sm:$0xff]  ;;  %vm136_vm0 = vcmask 261120   ;;  %vm452_vm1 = vcmask 130112  }
  0x3b   :  { %v88_v1 = vld [vmem:[#allocation7] sm:$0xff]  ;;  %v89_v6 = vld [vmem:[#allocation7 + $0x8] sm:$0xff]  ;;  %v58_v10 = vld [vmem:[#allocation2 + $0x10] sm:$0xff]  ;;  %vm459_vm2 = vcmask 195712   ;;  %vm466_vm3 = vcmask 261312   ;;  %vm473_vm4 = vcmask 326912  }
  0x3c   :  { %v72_v2 = vld [vmem:[#allocation5] sm:$0xff]  ;;  %v185_v3 = vsub.f32 %v56_v0, %v88_v1  ;;  %v73_v7 = vld [vmem:[#allocation5 + $0x8] sm:$0xff]  ;;  %v186_v8 = vsub.f32 %v57_v5, %v89_v6  ;;  %v90_v11 = vld [vmem:[#allocation7 + $0x10] sm:$0xff]  ;;  %vm480_vm5 = vcmask 392512   ;;  %vm487_vm6 = vcmask 458112   ;;  %s1030_s2 = smov [#allocation8]  }
  0x3d   :  { %v104_v4 = vsub.f32 %v56_v0, %v72_v2  ;;  %v105_v9 = vsub.f32 %v57_v5, %v73_v7  ;;  %v74_v12 = vld [vmem:[#allocation5 + $0x10] sm:$0xff]  ;;  %v187_v15 = vsub.f32 %v58_v10, %v90_v11  ;;  %v59_v17 = vld [vmem:[#allocation2 + $0x18] sm:$0xff]  ;;  %v60_v30 = vld [vmem:[#allocation2 + $0x20] sm:$0xff]  ;;  %vm494_vm7 = vcmask 523712   ;;  %s851_s23 = sshll.u32 %s1030_s2, 4  ;;  %s852_s23 = int_to_ptr.vmem [resolvable:$true] %s851_s23 }
  0x3e   :  { %v201_v13 = vmul.f32 %v185_v3, %v185_v3  ;;  %v106_v16 = vsub.f32 %v58_v10, %v74_v12  ;;  %v91_v18 = vld [vmem:[#allocation7 + $0x18] sm:$0xff]  ;;  %v202_v20 = vmul.f32 %v186_v8, %v186_v8  ;;  %v92_v31 = vld [vmem:[#allocation7 + $0x20] sm:$0xff]  ;;  %v61_v39 = vld [vmem:[#allocation2 + $0x28] sm:$0xff]  ;;  %vm501_vm8 = vcmask 589312   ;;  %s997_s24 = scalar_lea.vmem %s852_s23, 64  ;;  %p1002_p11 = scmp.lt.s32.totalorder %s852_s23, %s852_s23 }
  0x3f   :  { %v120_v14 = vmul.f32 %v104_v4, %v104_v4  ;;  %v75_v19 = vld [vmem:[#allocation5 + $0x18] sm:$0xff]  ;;  %v121_v21 = vmul.f32 %v105_v9, %v105_v9  ;;  %v188_v24 = vsub.f32 %v59_v17, %v91_v18  ;;  %v203_v28 = vmul.f32 %v187_v15, %v187_v15  ;;  %v76_v32 = vld [vmem:[#allocation5 + $0x20] sm:$0xff]  ;;  %v93_v40 = vld [vmem:[#allocation7 + $0x28] sm:$0xff]  ;;  %p998_p10 = scmp.ne.s32.totalorder %s852_s23, %s997_s24  ;;  %p1003_p12 = scmp.lt.s32.totalorder %s997_s24, %s997_s24 }
  0x40   :  { %v217_v22 = vsel %vm136_vm0, %v201_v13, 0.0  ;;  %v107_v25 = vsub.f32 %v59_v17, %v75_v19  ;;  %v220_v26 = vsel %vm136_vm0, %v202_v20, 0.0  ;;  %v122_v29 = vmul.f32 %v106_v16, %v106_v16  ;;  %v77_v41 = vld [vmem:[#allocation5 + $0x28] sm:$0xff]  ;;  %v62_v48 = vld [vmem:[#allocation2 + $0x30] sm:$0xff]  ;;  %v63_v57 = vld [vmem:[#allocation2 + $0x38] sm:$0xff] }
  0x41   :  { %v137_v23 = vsel %vm136_vm0, %v120_v14, 0.0  ;;  %218 = vadd.xlane.f32.xlu1 %v217_v22  ;;  %v140_v27 = vsel %vm136_vm0, %v121_v21, 0.0  ;;  %v204_v33 = vmul.f32 %v188_v24, %v188_v24  ;;  %v223_v35 = vsel %vm136_vm0, %v203_v28, 0.0  ;;  %v94_v49 = vld [vmem:[#allocation7 + $0x30] sm:$0xff]  ;;  %v95_v58 = vld [vmem:[#allocation7 + $0x38] sm:$0xff]  ;;  %v64_v2 = vld [vmem:[#allocation2 + $0x40] sm:$0xff]  ;;  %p1004_p13 = por %p1003_p12, %p1002_p11 }
  0x42   :  { %138 = vadd.xlane.f32.xlu0 %v137_v23  ;;  %v123_v34 = vmul.f32 %v107_v25, %v107_v25  ;;  %v143_v36 = vsel %vm136_vm0, %v122_v29, 0.0  ;;  %v189_v37 = vsub.f32 %v60_v30, %v92_v31  ;;  %v108_v38 = vsub.f32 %v60_v30, %v76_v32  ;;  %v78_v50 = vld [vmem:[#allocation5 + $0x30] sm:$0xff]  ;;  %v79_v59 = vld [vmem:[#allocation5 + $0x38] sm:$0xff]  ;;  %v96_v3 = vld [vmem:[#allocation7 + $0x40] sm:$0xff] }
  0x43   :  { %v226_v42 = vsel %vm136_vm0, %v204_v33, 0.0  ;;  %v190_v46 = vsub.f32 %v61_v39, %v93_v40  ;;  %v109_v47 = vsub.f32 %v61_v39, %v77_v41  ;;  %v191_v51 = vsub.f32 %v62_v48, %v94_v49  ;;  %v80_v4 = vld [vmem:[#allocation5 + $0x40] sm:$0xff]  ;;  %v65_v11 = vld [vmem:[#allocation2 + $0x48] sm:$0xff]  ;;  %v66_v20 = vld [vmem:[#allocation2 + $0x50] sm:$0xff]  ;;  %p1005_p0 = pnand %p1004_p13, %p998_p10 }
  0x44   :  { %v146_v43 = vsel %vm136_vm0, %v123_v34, 0.0  ;;  %v205_v44 = vmul.f32 %v189_v37, %v189_v37  ;;  %v124_v45 = vmul.f32 %v108_v38, %v108_v38  ;;  %v110_v52 = vsub.f32 %v62_v48, %v78_v50  ;;  %v97_v12 = vld [vmem:[#allocation7 + $0x48] sm:$0xff]  ;;  %v98_v21 = vld [vmem:[#allocation7 + $0x50] sm:$0xff]  ;;  %v67_v29 = vld [vmem:[#allocation2 + $0x58] sm:$0xff] }
  0x45   :  { %221 = vadd.xlane.f32.xlu1 %v220_v26  ;;  %v206_v55 = vmul.f32 %v190_v46, %v190_v46  ;;  %v125_v56 = vmul.f32 %v109_v47, %v109_v47  ;;  %v207_v60 = vmul.f32 %v191_v51, %v191_v51  ;;  %v192_v61 = vsub.f32 %v63_v57, %v95_v58  ;;  %v81_v13 = vld [vmem:[#allocation5 + $0x48] sm:$0xff]  ;;  %v82_v22 = vld [vmem:[#allocation5 + $0x50] sm:$0xff]  ;;  %v99_v30 = vld [vmem:[#allocation7 + $0x58] sm:$0xff] }
  0x46   :  { %141 = vadd.xlane.f32.xlu0 %v140_v27  ;;  %v229_v53 = vsel %vm136_vm0, %v205_v44, 0.0  ;;  %v149_v54 = vsel %vm136_vm0, %v124_v45, 0.0  ;;  %v126_v0 = vmul.f32 %v110_v52, %v110_v52  ;;  %v111_v1 = vsub.f32 %v63_v57, %v79_v59  ;;  %v83_v31 = vld [vmem:[#allocation5 + $0x58] sm:$0xff]  ;;  %v68_v38 = vld [vmem:[#allocation2 + $0x60] sm:$0xff]  ;;  %v69_v47 = vld [vmem:[#allocation2 + $0x68] sm:$0xff] }
  0x47   :  { %v232_v62 = vsel %vm136_vm0, %v206_v55, 0.0  ;;  %v152_v63 = vsel %vm136_vm0, %v125_v56, 0.0  ;;  %v235_v5 = vsel %vm136_vm0, %v207_v60, 0.0  ;;  %v208_v6 = vmul.f32 %v192_v61, %v192_v61  ;;  %v100_v39 = vld [vmem:[#allocation7 + $0x60] sm:$0xff]  ;;  %v101_v48 = vld [vmem:[#allocation7 + $0x68] sm:$0xff]  ;;  %v70_v56 = vld [vmem:[#allocation2 + $0x70] sm:$0xff] }
  0x48   :  { %v155_v7 = vsel %vm136_vm0, %v126_v0, 0.0  ;;  %v127_v8 = vmul.f32 %v111_v1, %v111_v1  ;;  %v193_v9 = vsub.f32 %v64_v2, %v96_v3  ;;  %v112_v10 = vsub.f32 %v64_v2, %v80_v4  ;;  %v84_v40 = vld [vmem:[#allocation5 + $0x60] sm:$0xff]  ;;  %v85_v49 = vld [vmem:[#allocation5 + $0x68] sm:$0xff]  ;;  %v102_v57 = vld [vmem:[#allocation7 + $0x70] sm:$0xff] }
  0x49   :  { %224 = vadd.xlane.f32.xlu1 %v223_v35  ;;  %v238_v14 = vsel %vm136_vm0, %v208_v6, 0.0  ;;  %v194_v15 = vsub.f32 %v65_v11, %v97_v12  ;;  %v113_v19 = vsub.f32 %v65_v11, %v81_v13  ;;  %v195_v23 = vsub.f32 %v66_v20, %v98_v21  ;;  %v86_v58 = vld [vmem:[#allocation5 + $0x70] sm:$0xff]  ;;  %v71_v1 = vld [vmem:[#allocation2 + $0x78] sm:$0xff] }
  0x4a   :  { %144 = vadd.xlane.f32.xlu0 %v143_v36  ;;  %v158_v16 = vsel %vm136_vm0, %v127_v8, 0.0  ;;  %v209_v17 = vmul.f32 %v193_v9, %v193_v9  ;;  %v128_v18 = vmul.f32 %v112_v10, %v112_v10  ;;  %v114_v24 = vsub.f32 %v66_v20, %v82_v22  ;;  %v103_v2 = vld [vmem:[#allocation7 + $0x78] sm:$0xff] }
  0x4b   :  { %v210_v27 = vmul.f32 %v194_v15, %v194_v15  ;;  %v129_v28 = vmul.f32 %v113_v19, %v113_v19  ;;  %v211_v32 = vmul.f32 %v195_v23, %v195_v23  ;;  %v196_v33 = vsub.f32 %v67_v29, %v99_v30  ;;  %v87_v3 = vld [vmem:[#allocation5 + $0x78] sm:$0xff] }
  0x4c   :  { %v241_v25 = vsel %vm136_vm0, %v209_v17, 0.0  ;;  %v161_v26 = vsel %vm136_vm0, %v128_v18, 0.0  ;;  %v130_v36 = vmul.f32 %v114_v24, %v114_v24  ;;  %v115_v37 = vsub.f32 %v67_v29, %v83_v31 }
  0x4d   :  { %227 = vadd.xlane.f32.xlu1 %v226_v42  ;;  %v244_v34 = vsel %vm136_vm0, %v210_v27, 0.0  ;;  %v164_v35 = vsel %vm136_vm0, %v129_v28, 0.0  ;;  %v247_v41 = vsel %vm136_vm0, %v211_v32, 0.0  ;;  %v212_v42 = vmul.f32 %v196_v33, %v196_v33 }
  0x4e   :  { %147 = vadd.xlane.f32.xlu0 %v146_v43  ;;  %v167_v43 = vsel %vm136_vm0, %v130_v36, 0.0  ;;  %v131_v44 = vmul.f32 %v115_v37, %v115_v37  ;;  %v197_v45 = vsub.f32 %v68_v38, %v100_v39  ;;  %v116_v46 = vsub.f32 %v68_v38, %v84_v40 }
  0x4f   :  { %v250_v50 = vsel %vm136_vm0, %v212_v42, 0.0  ;;  %v198_v51 = vsub.f32 %v69_v47, %v101_v48  ;;  %v117_v55 = vsub.f32 %v69_v47, %v85_v49  ;;  %v199_v59 = vsub.f32 %v70_v56, %v102_v57 }
  0x50   :  { %v170_v52 = vsel %vm136_vm0, %v131_v44, 0.0  ;;  %v118_v60 = vsub.f32 %v70_v56, %v86_v58  ;;  %v119_v9 = vsub.f32 %v71_v1, %v87_v3  ;;  %v441_v18 = vlaneseq }
  0x51   :  { %230 = vadd.xlane.f32.xlu1 %v229_v53  ;;  %v213_v53 = vmul.f32 %v197_v45, %v197_v45  ;;  %v133_v0 = vmul.f32 %v117_v55, %v117_v55  ;;  %v215_v4 = vmul.f32 %v199_v59, %v199_v59  ;;  %vm508_vm9 = vcmask 654912  }
  0x52   :  { %150 = vadd.xlane.f32.xlu0 %v149_v54  ;;  %v132_v54 = vmul.f32 %v116_v46, %v116_v46  ;;  %v134_v8 = vmul.f32 %v118_v60, %v118_v60  ;;  %v135_v13 = vmul.f32 %v119_v9, %v119_v9  ;;  %v1138_v23 = vand.u32 127, %v441_v18 }
  0x53   :  { %v253_v61 = vsel %vm136_vm0, %v213_v53, 0.0  ;;  %v259_v10 = vsel %vm136_vm0, %v215_v4, 0.0  ;;  %vm515_vm10 = vcmask 720512   ;;  %vm522_vm11 = vcmask 786112  }
  0x54   :  { %v179_v11 = vsel %vm136_vm0, %v134_v8, 0.0  ;;  %v182_v15 = vsel %vm136_vm0, %v135_v13, 0.0  ;;  %v447_v30 = vadd.s32 4294967288, %v1138_v23  ;;  %v454_v33 = vadd.s32 4294967280, %v1138_v23 }
  0x55   :  { %233 = vadd.xlane.f32.xlu1 %v232_v62  ;;  %v173_v62 = vsel %vm136_vm0, %v132_v54, 0.0  ;;  %v461_v38 = vadd.s32 4294967272, %v1138_v23  ;;  %v468_v47 = vadd.s32 4294967264, %v1138_v23  ;;  %v475_v49 = vadd.s32 4294967256, %v1138_v23 }
  0x56   :  { %153 = vadd.xlane.f32.xlu0 %v152_v63  ;;  %v214_v63 = vmul.f32 %v198_v51, %v198_v51  ;;  %v489_v54 = vadd.s32 4294967240, %v1138_v23  ;;  %v496_v55 = vadd.s32 4294967232, %v1138_v23  ;;  %v503_v58 = vadd.s32 4294967224, %v1138_v23 }
  0x57   :  { %v531_v9 = vadd.s32 4294967192, %v1138_v23  ;;  %v538_v13 = vadd.s32 4294967184, %v1138_v23  ;;  %vm529_vm12 = vcmask 851712   ;;  %vm536_vm13 = vcmask 917312  }
  0x58   :  { %v256_v6 = vsel %vm136_vm0, %v214_v63, 0.0  ;;  %vm543_vm14 = vcmask 982912   ;;  %vm550_vm15 = vcmask 1048512  }
  0x59   :  { %236 = vadd.xlane.f32.xlu1 %v235_v5  ;;  %v200_v5 = vsub.f32 %v71_v1, %v103_v2 }
  0x5a   :  { %156 = vadd.xlane.f32.xlu0 %v155_v7  ;;  %v176_v7 = vsel %vm136_vm0, %v133_v0, 0.0 }
  0x5b   :  { %v216_v12 = vmul.f32 %v200_v5, %v200_v5  ;;  %v517_v5 = vadd.s32 4294967208, %v1138_v23 }
  0x5d   :  { %239 = vadd.xlane.f32.xlu1 %v238_v14  ;;  %v262_v14 = vsel %vm136_vm0, %v216_v12, 0.0 }
  0x5e   :  { %159 = vadd.xlane.f32.xlu0 %v158_v16 }
  0x61   :  { %242 = vadd.xlane.f32.xlu1 %v241_v25  ;;  %v1141_v25 = vshrl.u32 %v441_v18, 7 }
  0x62   :  { %162 = vadd.xlane.f32.xlu0 %v161_v26 }
  0x63   :  { %v1154_v36 = vsub.s32 %v1138_v23, %v1141_v25  ;;  %v1167_v45 = vsub.s32 %v454_v33, %v1141_v25  ;;  %v1173_v51 = vsub.s32 %v461_v38, %v1141_v25  ;;  %v1184_v59 = vsub.s32 %v468_v47, %v1141_v25 }
  0x64   :  { %v1189_v63 = vsub.s32 %v475_v49, %v1141_v25  ;;  %v1199_v4 = vsub.s32 %v489_v54, %v1141_v25  ;;  %v1207_v8 = vsub.s32 %v503_v58, %v1141_v25  ;;  %v1245_v38 = vsub.s32 %v538_v13, %v1141_v25 }
  0x65   :  { %245 = vadd.xlane.f32.xlu1 %v244_v34 }
  0x66   :  { %165 = vadd.xlane.f32.xlu0 %v164_v35 }
  0x69   :  { %248 = vadd.xlane.f32.xlu1 %v247_v41  ;;  %v1162_v41 = vsub.s32 %v447_v30, %v1141_v25 }
  0x6a   :  { %168 = vadd.xlane.f32.xlu0 %v167_v43 }
  0x6d   :  { %251 = vadd.xlane.f32.xlu1 %v250_v50  ;;  %v482_v50 = vadd.s32 4294967248, %v1138_v23 }
  0x6e   :  { %171 = vadd.xlane.f32.xlu0 %v170_v52 }
  0x6f   :  { %v1192_v0 = vsub.s32 %v482_v50, %v1141_v25 }
  0x71   :  { %254 = vadd.xlane.f32.xlu1 %v253_v61  ;;  %v510_v61 = vadd.s32 4294967216, %v1138_v23 }
  0x72   :  { %174 = vadd.xlane.f32.xlu0 %v173_v62 }
  0x73   :  { %v1212_v12 = vsub.s32 %v510_v61, %v1141_v25 }
  0x75   :  { %257 = vadd.xlane.f32.xlu1 %v256_v6  ;;  %v524_v6 = vadd.s32 4294967200, %v1138_v23 }
  0x76   :  { %177 = vadd.xlane.f32.xlu0 %v176_v7  ;;  %v1204_v7 = vsub.s32 %v496_v55, %v1141_v25 }
  0x79   :  { %260 = vadd.xlane.f32.xlu1 %v259_v10 }
  0x7a   :  { %180 = vadd.xlane.f32.xlu0 %v179_v11 }
  0x7d   :  { %263 = vadd.xlane.f32.xlu1 %v262_v14  ;;  %v545_v14 = vadd.s32 4294967176, %v1138_v23  ;;  %v1228_v23 = vsub.s32 %v517_v5, %v1141_v25 }
  0x7e   :  { %183 = vadd.xlane.f32.xlu0 %v182_v15 }
  0xce   :  { %v1128_v16 = vpop.xlane.xlu1 %218 }
  0xcf   :  { %v1130_v17 = vpop.xlane.xlu0 %138  ;;  %v345_v19 = vmul.f32 0.25, %v1128_v16 }
  0xd0   :  { %v265_v27 = vmul.f32 0.25, %v1130_v17 }
  0xd1   :  { %v361_v26 = vadd.f32 1.0, %v345_v19 }
  0xd2   :  { %v1133_v20 = vpop.xlane.xlu1 %221  ;;  %v281_v37 = vadd.f32 1.0, %v265_v27 }
  0xd3   :  { %v1135_v21 = vpop.xlane.xlu0 %141  ;;  %v346_v22 = vmul.f32 0.25, %v1133_v20  ;;  %867 = vlog2.f32 %v361_v26  ;;  %v577_v15 = vrot.slane %v1133_v20, %v1162_v41  ;;  %v1231_v20 = vsub.s32 %v524_v6, %v1141_v25 }
  0xd4   :  { %v266_v24 = vmul.f32 0.25, %v1135_v21  ;;  %v451_v18 = vrot.slane %v1135_v21, %v1162_v41 }
  0xd5   :  { %v362_v32 = vadd.f32 1.0, %v346_v22 }
  0xd6   :  { %v1144_v28 = vpop.xlane.xlu1 %224  ;;  %v282_v35 = vadd.f32 1.0, %v266_v24 }
  0xd7   :  { %v1146_v29 = vpop.xlane.xlu0 %144  ;;  %v347_v31 = vmul.f32 0.25, %v1144_v28  ;;  %869 = vlog2.f32 %v362_v32  ;;  %v582_v24 = vrot.slane %v1144_v28, %v1167_v45  ;;  %v446_v32 = vrot.slane %v1130_v17, %v1154_v36 }
  0xd8   :  { %v267_v34 = vmul.f32 0.25, %v1146_v29  ;;  %871 = vlog2.f32 %v282_v35  ;;  %v1238_v28 = vsub.s32 %v531_v9, %v1141_v25 }
  0xd9   :  { %v363_v42 = vadd.f32 1.0, %v347_v31  ;;  %873 = vlog2.f32 %v281_v37  ;;  %v573_v31 = vrot.slane %v1128_v16, %v1154_v36 }
  0xda   :  { %v1157_v39 = vpop.xlane.xlu1 %227  ;;  %v283_v46 = vadd.f32 1.0, %v267_v34  ;;  %v458_v34 = vrot.slane %v1146_v29, %v1167_v45 }
  0xdb   :  { %v1159_v40 = vpop.xlane.xlu0 %147  ;;  %v348_v43 = vmul.f32 0.25, %v1157_v39  ;;  %875 = vlog2.f32 %v363_v42  ;;  %v587_v35 = vrot.slane %v1157_v39, %v1173_v51  ;;  %v578_v16 = vsel %vm452_vm1, %v577_v15, %v573_v31 }
  0xdc   :  { %v268_v44 = vmul.f32 0.25, %v1159_v40  ;;  %877 = vlog2.f32 %v283_v46  ;;  %v465_v39 = vrot.slane %v1159_v40, %v1173_v51 }
  0xdd   :  { %v364_v48 = vadd.f32 1.0, %v348_v43  ;;  %v868_v10 = vpop.eup %867  ;;  %v453_v43 = vsel %vm452_vm1, %v451_v18, %v446_v32 }
  0xde   :  { %v1175_v52 = vpop.xlane.xlu1 %230  ;;  %v284_v56 = vadd.f32 1.0, %v268_v44  ;;  %v378_v21 = vmul.f32 0.6931472, %v868_v10  ;;  %v1250_v44 = vsub.s32 %v545_v14, %v1141_v25  ;;  %v460_v58 = vsel %vm459_vm2, %v458_v34, %v453_v43 }
  0xdf   :  { %v1177_v53 = vpop.xlane.xlu0 %150  ;;  %v349_v57 = vmul.f32 0.25, %v1175_v52  ;;  %879 = vlog2.f32 %v364_v48  ;;  %v583_v48 = vsel %vm459_vm2, %v582_v24, %v578_v16  ;;  %v467_v10 = vsel %vm466_vm3, %v465_v39, %v460_v58 }
  0xe0   :  { %v269_v60 = vmul.f32 0.25, %v1177_v53  ;;  %881 = vlog2.f32 %v284_v56  ;;  %v409_v55 = vsub.f32 0.0, %v378_v21  ;;  %v472_v61 = vrot.slane %v1177_v53, %v1184_v59 }
  0xe1   :  { %v365_v62 = vadd.f32 1.0, %v349_v57  ;;  %v870_v22 = vpop.eup %869  ;;  %v592_v57 = vrot.slane %v1175_v52, %v1184_v59 }
  0xe2   :  { %v285_v1 = vadd.f32 1.0, %v269_v60  ;;  %v1194_v2 = vpop.xlane.xlu1 %233  ;;  %v872_v30 = vpop.eup %871  ;;  %v380_v47 = vmul.f32 0.6931472, %v870_v22  ;;  %v588_v60 = vsel %vm466_vm3, %v587_v35, %v583_v48  ;;  %v767_v53 = vrot.slane %v409_v55, %v1154_v36 }
  0xe3   :  { %v1196_v3 = vpop.xlane.xlu0 %153  ;;  %v350_v11 = vmul.f32 0.25, %v1194_v2  ;;  %883 = vlog2.f32 %v365_v62  ;;  %v874_v33 = vpop.eup %873  ;;  %v300_v29 = vmul.f32 0.6931472, %v872_v30  ;;  %v593_v18 = vsel %vm473_vm4, %v592_v57, %v588_v60 }
  0xe4   :  { %v270_v19 = vmul.f32 0.25, %v1196_v3  ;;  %885 = vlog2.f32 %v285_v1  ;;  %v298_v56 = vmul.f32 0.6931472, %v874_v33  ;;  %v410_v6 = vsub.f32 0.0, %v380_v47 }
  0xe5   :  { %v366_v37 = vadd.f32 1.0, %v350_v11  ;;  %v876_v42 = vpop.eup %875  ;;  %v330_v9 = vsub.f32 0.0, %v300_v29  ;;  %v474_v30 = vsel %vm473_vm4, %v472_v61, %v467_v10  ;;  %v597_v21 = vrot.slane %v1194_v2, %v1189_v63 }
  0xe6   :  { %v1223_v26 = vpop.xlane.xlu1 %236  ;;  %v286_v17 = vadd.f32 1.0, %v270_v19  ;;  %v878_v46 = vpop.eup %877  ;;  %v382_v62 = vmul.f32 0.6931472, %v876_v42  ;;  %v329_v15 = vsub.f32 0.0, %v298_v56  ;;  %v479_v34 = vrot.slane %v1196_v3, %v1189_v63 }
  0xe7   :  { %v1225_v27 = vpop.xlane.xlu0 %156  ;;  %v351_v25 = vmul.f32 0.25, %v1223_v26  ;;  %887 = vlog2.f32 %v366_v37  ;;  %v302_v1 = vmul.f32 0.6931472, %v878_v46  ;;  %v771_v37 = vrot.slane %v410_v6, %v1162_v41 }
  0xe8   :  { %889 = vlog2.f32 %v286_v17  ;;  %v271_v5 = vmul.f32 0.25, %v1225_v27  ;;  %v411_v32 = vsub.f32 0.0, %v382_v62  ;;  %v674_v42 = vrot.slane %v330_v9, %v1162_v41 }
  0xe9   :  { %v880_v54 = vpop.eup %879  ;;  %v367_v19 = vadd.f32 1.0, %v351_v25  ;;  %v331_v33 = vsub.f32 0.0, %v302_v1  ;;  %v602_v43 = vrot.slane %v1223_v26, %v1192_v0  ;;  %v670_v3 = vrot.slane %v329_v15, %v1154_v36 }
  0xea   :  { %v1255_v49 = vpop.xlane.xlu1 %239  ;;  %v882_v40 = vpop.eup %881  ;;  %v384_v52 = vmul.f32 0.6931472, %v880_v54  ;;  %v287_v35 = vadd.f32 1.0, %v271_v5  ;;  %v598_v39 = vsel %vm480_vm5, %v597_v21, %v593_v18  ;;  %v776_v41 = vrot.slane %v411_v32, %v1167_v45 }
  0xeb   :  { %v1257_v50 = vpop.xlane.xlu0 %159  ;;  %v304_v24 = vmul.f32 0.6931472, %v882_v40  ;;  %v352_v31 = vmul.f32 0.25, %v1255_v49  ;;  %891 = vlog2.f32 %v367_v19  ;;  %v679_v55 = vrot.slane %v331_v33, %v1167_v45 }
  0xec   :  { %v412_v16 = vsub.f32 0.0, %v384_v52  ;;  %v272_v29 = vmul.f32 0.25, %v1257_v50  ;;  %893 = vlog2.f32 %v287_v35  ;;  %v486_v26 = vrot.slane %v1225_v27, %v1192_v0 }
  0xed   :  { %v884_v14 = vpop.eup %883  ;;  %v332_v48 = vsub.f32 0.0, %v304_v24  ;;  %v368_v54 = vadd.f32 1.0, %v352_v31  ;;  %v772_v57 = vsel %vm452_vm1, %v771_v37, %v767_v53  ;;  %v675_v25 = vsel %vm452_vm1, %v674_v42, %v670_v3 }
  0xee   :  { %v1268_v11 = vpop.xlane.xlu1 %242  ;;  %v886_v22 = vpop.eup %885  ;;  %v386_v46 = vmul.f32 0.6931472, %v884_v14  ;;  %v781_v58 = vrot.slane %v412_v16, %v1173_v51  ;;  %v481_v36 = vsel %vm480_vm5, %v479_v34, %v474_v30  ;;  %v603_v1 = vsel %vm487_vm6, %v602_v43, %v598_v39 }
  0xef   :  { %v1270_v13 = vpop.xlane.xlu0 %162  ;;  %v306_v47 = vmul.f32 0.6931472, %v886_v22  ;;  %v288_v27 = vadd.f32 1.0, %v272_v29  ;;  %v684_v5 = vrot.slane %v332_v48, %v1173_v51  ;;  %895 = vlog2.f32 %v368_v54 }
  0xf0   :  { %v413_v45 = vsub.f32 0.0, %v386_v46  ;;  %v607_v6 = vrot.slane %v1255_v49, %v1199_v4  ;;  %v353_v9 = vmul.f32 0.25, %v1268_v11  ;;  %v777_v52 = vsel %vm459_vm2, %v776_v41, %v772_v57 }
  0xf1   :  { %v888_v56 = vpop.eup %887  ;;  %v333_v62 = vsub.f32 0.0, %v306_v47  ;;  %v680_v10 = vsel %vm459_vm2, %v679_v55, %v675_v25  ;;  %v488_v53 = vsel %vm487_vm6, %v486_v26, %v481_v36  ;;  %v782_v15 = vsel %vm466_vm3, %v781_v58, %v777_v52 }
  0xf2   :  { %v1284_v17 = vpop.xlane.xlu1 %245  ;;  %v890_v40 = vpop.eup %889  ;;  %v388_v14 = vmul.f32 0.6931472, %v888_v56  ;;  %v493_v19 = vrot.slane %v1257_v50, %v1199_v4  ;;  %v273_v51 = vmul.f32 0.25, %v1270_v13  ;;  %v786_v24 = vrot.slane %v413_v45, %v1184_v59 }
  0xf3   :  { %v1286_v2 = vpop.xlane.xlu0 %165  ;;  %v308_v18 = vmul.f32 0.6931472, %v890_v40  ;;  %v689_v30 = vrot.slane %v333_v62, %v1184_v59  ;;  %897 = vlog2.f32 %v288_v27  ;;  %v354_v21 = vmul.f32 0.25, %v1284_v17 }
  0xf4   :  { %v685_v31 = vsel %vm466_vm3, %v684_v5, %v680_v10  ;;  %v608_v32 = vsel %vm494_vm7, %v607_v6, %v603_v1  ;;  %v369_v33 = vadd.f32 1.0, %v353_v9  ;;  %v274_v50 = vmul.f32 0.25, %v1286_v2 }
  0xf5   :  { %v892_v34 = vpop.eup %891  ;;  %v414_v35 = vsub.f32 0.0, %v388_v14  ;;  %v612_v37 = vrot.slane %v1268_v11, %v1204_v7  ;;  %v500_v42 = vrot.slane %v1270_v13, %v1204_v7  ;;  %v334_v16 = vsub.f32 0.0, %v308_v18 }
  0xf6   :  { %v1299_v60 = vpop.xlane.xlu1 %248  ;;  %v495_v43 = vsel %vm494_vm7, %v493_v19, %v488_v53  ;;  %v289_v46 = vadd.f32 1.0, %v273_v51  ;;  %v894_v48 = vpop.eup %893  ;;  %v787_v39 = vsel %vm473_vm4, %v786_v24, %v782_v15  ;;  %v690_v11 = vsel %vm473_vm4, %v689_v30, %v685_v31 }
  0xf7   :  { %v1301_v61 = vpop.xlane.xlu0 %168  ;;  %v355_v59 = vmul.f32 0.25, %v1299_v60  ;;  %v370_v54 = vadd.f32 1.0, %v354_v21  ;;  %v390_v41 = vmul.f32 0.6931472, %v892_v34  ;;  %899 = vlog2.f32 %v369_v33 }
  0xf8   :  { %v275_v47 = vmul.f32 0.25, %v1301_v61  ;;  %v290_v55 = vadd.f32 1.0, %v274_v50  ;;  %v791_v56 = vrot.slane %v414_v35, %v1189_v63  ;;  %v613_v57 = vsel %vm501_vm8, %v612_v37, %v608_v32 }
  0xf9   :  { %v502_v25 = vsel %vm501_vm8, %v500_v42, %v495_v43  ;;  %v371_v58 = vadd.f32 1.0, %v355_v59  ;;  %v896_v36 = vpop.eup %895  ;;  %v694_v40 = vrot.slane %v334_v16, %v1189_v63  ;;  %v310_v45 = vmul.f32 0.6931472, %v894_v48 }
  0xfa   :  { %v1315_v22 = vpop.xlane.xlu1 %251  ;;  %901 = vlog2.f32 %v289_v46  ;;  %v291_v62 = vadd.f32 1.0, %v275_v47  ;;  %v617_v27 = vrot.slane %v1284_v17, %v1207_v8  ;;  %v415_v52 = vsub.f32 0.0, %v390_v41 }
  0xfb   :  { %v1317_v49 = vpop.xlane.xlu0 %171  ;;  %v356_v13 = vmul.f32 0.25, %v1315_v22  ;;  %903 = vlog2.f32 %v370_v54  ;;  %v392_v53 = vmul.f32 0.6931472, %v896_v36  ;;  %v507_v15 = vrot.slane %v1286_v2, %v1207_v8 }
  0xfc   :  { %v276_v26 = vmul.f32 0.25, %v1317_v49  ;;  %905 = vlog2.f32 %v290_v55  ;;  %v335_v17 = vsub.f32 0.0, %v310_v45  ;;  %v1356_v24 = vsel %vm480_vm5, %v791_v56, %v787_v39 }
  0xfd   :  { %v372_v5 = vadd.f32 1.0, %v356_v13  ;;  %v898_v14 = vpop.eup %897  ;;  %907 = vlog2.f32 %v371_v58  ;;  %v1359_v30 = vsel %vm480_vm5, %v694_v40, %v690_v11  ;;  %v622_v21 = vrot.slane %v1299_v60, %v1212_v12 }
  0xfe   :  { %v1332_v29 = vpop.xlane.xlu1 %254  ;;  %v292_v10 = vadd.f32 1.0, %v276_v26  ;;  %909 = vlog2.f32 %v291_v62  ;;  %v1363_v2 = vmul.f32 0.6931472, %v898_v14  ;;  %v618_v31 = vsel %vm508_vm9, %v617_v27, %v613_v57 }
  0xff   :  { %v1334_v3 = vpop.xlane.xlu0 %174  ;;  %v357_v6 = vmul.f32 0.25, %v1332_v29  ;;  %911 = vlog2.f32 %v372_v5  ;;  %v1367_v50 = vrot.slane %v415_v52, %v1192_v0  ;;  %v416_v34 = vsub.f32 0.0, %v392_v53 }
 0x100   :  { %v277_v63 = vmul.f32 0.25, %v1334_v3  ;;  %913 = vlog2.f32 %v292_v10  ;;  %v509_v35 = vsel %vm508_vm9, %v507_v15, %v502_v25  ;;  %v1373_v42 = vrot.slane %v335_v17, %v1192_v0 }
 0x101   :  { %v373_v18 = vadd.f32 1.0, %v357_v6  ;;  %v900_v60 = vpop.eup %899  ;;  %v627_v59 = vrot.slane %v1315_v22, %v1228_v23  ;;  %v623_v43 = vsel %vm515_vm10, %v622_v21, %v618_v31  ;;  %v514_v46 = vrot.slane %v1301_v61, %v1212_v12 }
 0x102   :  { %v1344_v1 = vpop.xlane.xlu1 %257  ;;  %v293_v19 = vadd.f32 1.0, %v277_v63  ;;  %v632_v47 = vrot.slane %v1332_v29, %v1231_v20  ;;  %v336_v39 = vsub.f32 0.0, %v1363_v2  ;;  %v801_v13 = vrot.slane %v416_v34, %v1199_v4 }
 0x103   :  { %v1349_v9 = vpop.xlane.xlu0 %177  ;;  %v358_v51 = vmul.f32 0.25, %v1344_v1  ;;  %915 = vlog2.f32 %v373_v18  ;;  %v637_v0 = vrot.slane %v1344_v1, %v1238_v28  ;;  %v1387_v41 = vmul.f32 0.6931472, %v900_v60 }
 0x104   :  { %917 = vlog2.f32 %v293_v19  ;;  %v278_v16 = vmul.f32 0.25, %v1349_v9  ;;  %v902_v48 = vpop.eup %901  ;;  %v521_v61 = vrot.slane %v1317_v49, %v1228_v23  ;;  %v628_v26 = vsel %vm522_vm11, %v627_v59, %v623_v43 }
 0x105   :  { %v374_v32 = vadd.f32 1.0, %v358_v51  ;;  %v904_v54 = vpop.eup %903  ;;  %v516_v36 = vsel %vm515_vm10, %v514_v46, %v509_v35  ;;  %v633_v40 = vsel %vm529_vm12, %v632_v47, %v628_v26  ;;  %v528_v45 = vrot.slane %v1334_v3, %v1231_v20 }
 0x106   :  { %v261_v33 = vpop.xlane.xlu1 %260  ;;  %v294_v11 = vadd.f32 1.0, %v278_v16  ;;  %v906_v29 = vpop.eup %905  ;;  %v314_v27 = vmul.f32 0.6931472, %v902_v48  ;;  %v638_v5 = vsel %vm536_vm13, %v637_v0, %v633_v40  ;;  %v535_v6 = vrot.slane %v1349_v9, %v1238_v28 }
 0x107   :  { %v1370_v37 = vpop.xlane.xlu0 %180  ;;  %919 = vlog2.f32 %v374_v32  ;;  %v359_v22 = vmul.f32 0.25, %v261_v33  ;;  %v642_v57 = vrot.slane %v261_v33, %v1245_v38  ;;  %v908_v58 = vpop.eup %907  ;;  %v417_v3 = vsub.f32 0.0, %v1387_v41 }
 0x108   :  { %v279_v55 = vmul.f32 0.25, %v1370_v37  ;;  %921 = vlog2.f32 %v294_v11  ;;  %v910_v1 = vpop.eup %909  ;;  %v542_v10 = vrot.slane %v1370_v37, %v1245_v38  ;;  %v523_v15 = vsel %vm522_vm11, %v521_v61, %v516_v36 }
 0x109   :  { %v375_v56 = vadd.f32 1.0, %v359_v22  ;;  %v912_v52 = vpop.eup %911  ;;  %v643_v18 = vsel %vm543_vm14, %v642_v57, %v638_v5  ;;  %v396_v51 = vmul.f32 0.6931472, %v904_v54  ;;  %v530_v9 = vsel %vm529_vm12, %v528_v45, %v523_v15 }
 0x10a   :  { %v264_v25 = vpop.xlane.xlu1 %263  ;;  %v295_v62 = vadd.f32 1.0, %v279_v55  ;;  %v914_v53 = vpop.eup %913  ;;  %v316_v33 = vmul.f32 0.6931472, %v906_v29  ;;  %v537_v34 = vsel %vm536_vm13, %v535_v6, %v530_v9  ;;  %v337_v59 = vsub.f32 0.0, %v314_v27 }
 0x10b   :  { %v184_v49 = vpop.xlane.xlu0 %183  ;;  %923 = vlog2.f32 %v375_v56  ;;  %v360_v63 = vmul.f32 0.25, %v264_v25  ;;  %v647_v14 = vrot.slane %v264_v25, %v1250_v44  ;;  %v398_v16 = vmul.f32 0.6931472, %v908_v58 }
 0x10c   :  { %925 = vlog2.f32 %v295_v62  ;;  %v280_v17 = vmul.f32 0.25, %v184_v49  ;;  %v549_v37 = vrot.slane %v184_v49, %v1250_v44  ;;  %v544_v43 = vsel %vm543_vm14, %v542_v10, %v537_v34 }
 0x10d   :  { %v916_v19 = vpop.eup %915  ;;  %v376_v21 = vadd.f32 1.0, %v360_v63  ;;  %v648_v31 = vsel %vm550_vm15, %v647_v14, %v643_v18  ;;  %v318_v46 = vmul.f32 0.6931472, %v910_v1  ;;  %v400_v47 = vmul.f32 0.6931472, %v912_v52 }
 0x10e   :  { %v918_v32 = vpop.eup %917  ;;  %650 = vst [vmem:[#allocation8 + $0x1] sm:$0x1] %v648_v31  ;;  %v296_v35 = vadd.f32 1.0, %v280_v17  ;;  %v551_v48 = vsel %vm550_vm15, %v549_v37, %v544_v43  ;;  %v797_v0 = vsel %vm487_vm6, %v1367_v50, %v1356_v24  ;;  %v418_v11 = vsub.f32 0.0, %v396_v51 }
 0x10f   :  { %927 = vlog2.f32 %v376_v21  ;;  %v320_v22 = vmul.f32 0.6931472, %v914_v53  ;;  %v402_v54 = vmul.f32 0.6931472, %v916_v19  ;;  %553 = vst [vmem:[#allocation8] sm:$0x1] %v551_v48  ;;  %v700_v61 = vsel %vm487_vm6, %v1373_v42, %v1359_v30 }
 0x110   :  { %929 = vlog2.f32 %v296_v35  ;;  %v338_v55 = vsub.f32 0.0, %v316_v33  ;;  %v322_v29 = vmul.f32 0.6931472, %v918_v32  ;;  %v802_v56 = vsel %vm494_vm7, %v801_v13, %v797_v0 }
 0x111   :  { %v920_v60 = vpop.eup %919  ;;  %v704_v57 = vrot.slane %v336_v39, %v1199_v4  ;;  %v419_v25 = vsub.f32 0.0, %v398_v16  ;;  %v806_v58 = vrot.slane %v417_v3, %v1204_v7  ;;  %v709_v36 = vrot.slane %v337_v59, %v1204_v7 }
 0x112   :  { %v922_v41 = vpop.eup %921  ;;  %v404_v26 = vmul.f32 0.6931472, %v920_v60  ;;  %v339_v40 = vsub.f32 0.0, %v318_v46  ;;  %v420_v45 = vsub.f32 0.0, %v400_v47  ;;  %v811_v30 = vrot.slane %v418_v11, %v1207_v8 }
 0x113   :  { %v324_v24 = vmul.f32 0.6931472, %v922_v41  ;;  %v340_v42 = vsub.f32 0.0, %v320_v22  ;;  %v421_v49 = vsub.f32 0.0, %v402_v54  ;;  %v714_v13 = vrot.slane %v338_v55, %v1207_v8 }
 0x114   :  { %v341_v27 = vsub.f32 0.0, %v322_v29  ;;  %v422_v2 = vsub.f32 0.0, %v404_v26  ;;  %v705_v39 = vsel %vm494_vm7, %v704_v57, %v700_v61  ;;  %v816_v5 = vrot.slane %v419_v25, %v1212_v12 }
 0x115   :  { %v924_v50 = vpop.eup %923  ;;  %v342_v6 = vsub.f32 0.0, %v324_v24  ;;  %v807_v7 = vsel %vm501_vm8, %v806_v58, %v802_v56  ;;  %v719_v10 = vrot.slane %v339_v40, %v1212_v12  ;;  %v821_v63 = vrot.slane %v420_v45, %v1228_v23 }
 0x116   :  { %v926_v62 = vpop.eup %925  ;;  %v406_v1 = vmul.f32 0.6931472, %v924_v50  ;;  %v710_v3 = vsel %vm501_vm8, %v709_v36, %v705_v39  ;;  %v812_v8 = vsel %vm508_vm9, %v811_v30, %v807_v7  ;;  %v724_v15 = vrot.slane %v340_v42, %v1228_v23 }
 0x117   :  { %v326_v4 = vmul.f32 0.6931472, %v926_v62  ;;  %v826_v18 = vrot.slane %v421_v49, %v1231_v20  ;;  %v715_v19 = vsel %vm508_vm9, %v714_v13, %v710_v3  ;;  %v729_v51 = vrot.slane %v341_v27, %v1231_v20 }
 0x118   :  { %v423_v52 = vsub.f32 0.0, %v406_v1  ;;  %v831_v9 = vrot.slane %v422_v2, %v1238_v28  ;;  %v817_v21 = vsel %vm515_vm10, %v816_v5, %v812_v8  ;;  %v734_v31 = vrot.slane %v342_v6, %v1238_v28 }
 0x119   :  { %v343_v14 = vsub.f32 0.0, %v326_v4  ;;  %v928_v53 = vpop.eup %927  ;;  %v720_v34 = vsel %vm515_vm10, %v719_v10, %v715_v19  ;;  %v822_v23 = vsel %vm522_vm11, %v821_v63, %v817_v21 }
 0x11a   :  { %v930_v17 = vpop.eup %929  ;;  %v408_v12 = vmul.f32 0.6931472, %v928_v53  ;;  %v836_v32 = vrot.slane %v423_v52, %v1245_v38  ;;  %v725_v60 = vsel %vm522_vm11, %v724_v15, %v720_v34  ;;  %v827_v20 = vsel %vm529_vm12, %v826_v18, %v822_v23 }
 0x11b   :  { %v328_v33 = vmul.f32 0.6931472, %v930_v17  ;;  %v739_v35 = vrot.slane %v343_v14, %v1245_v38  ;;  %v730_v16 = vsel %vm529_vm12, %v729_v51, %v725_v60  ;;  %v832_v28 = vsel %vm536_vm13, %v831_v9, %v827_v20 }
 0x11c   :  { %v424_v37 = vsub.f32 0.0, %v408_v12  ;;  %v735_v46 = vsel %vm536_vm13, %v734_v31, %v730_v16  ;;  %v837_v38 = vsel %vm543_vm14, %v836_v32, %v832_v28 }
 0x11d   :  { %v344_v59 = vsub.f32 0.0, %v328_v33  ;;  %v740_v48 = vsel %vm543_vm14, %v739_v35, %v735_v46 }
 0x11e   :  { %v841_v43 = vrot.slane %v424_v37, %v1250_v44 }
 0x11f   :  { %v744_v47 = vrot.slane %v344_v59, %v1250_v44 }
 0x120   :  { %v842_v0 = vsel %vm550_vm15, %v841_v43, %v837_v38 }
 0x121   :  { %v745_v11 = vsel %vm550_vm15, %v744_v47, %v740_v48  ;;  %844 = vst [vmem:[#allocation8 + $0x3] sm:$0x1] %v842_v0 }
 0x122   :  { %747 = vst [vmem:[#allocation8 + $0x2] sm:$0x1] %v745_v11 }
 0x123   :  { %1008 = shalt.err (!%p1005_p0)
}
 0x124   :  { %s1009_s28 = scalar_lea.hbm %s1471_s3, 64 }
 0x125   :  { %p1010_p1 = scmp.ne.s32.totalorder %s1471_s3, %s1009_s28  ;;  %p1013_p2 = scmp.lt.u32.totalorder %s1009_s28, %s1471_s3 }
 0x127   :  { %p1015_p3 = pnand %p1013_p2, %p1010_p1 }
 0x129   :  { %1018 = shalt.err (!%p1015_p3)
}
 0x12a   :  { %854 = dma.vmem_to_hbm [thread:$0]  %s852_s23, 64, %s1471_s3, [#allocation4]  }
 0x12b   :  { %1023 = dma.done.wait [#allocation4], 64  }
 0x12c   :  { %1024 = vsyncadd [#allocation4], 4294967232 }
 0x12d   :  { %858 = vsyncpa [#allocation3], 1 }
 0x12e   :  { %859 = vsyncpa [#allocation6], 1 }
 0x12f   :  { %860 = vsyncpa [#allocation4], 1 }

</bundles_post_ra>
